<compile_context>
chip_gen: v7x
topology: tpu7x:2x2x1
jax: 0.10.0
libtpu: 0.0.40
codegen_flags: <defaults>
</compile_context>

<pallas_src>
from functools import partial

import jax
import jax.numpy as jnp
from jax.experimental import pallas as pl
from jax.experimental.pallas import tpu as pltpu


def _round_up(x, m):
    return ((x + m - 1) // m) * m


def _pad2(x, rows, cols):
    return jnp.pad(x, ((0, rows - x.shape[0]), (0, cols - x.shape[1])))


def _const_spec(shape):
    # Weight/bias tile: same block for every grid step -> stays VMEM-resident.
    # TODO(synk): once H scales, add pipeline_mode=pl.Buffered(1) here to halve
    # resident weight VMEM (free at the current tiny sizes).
    return pl.BlockSpec(shape, lambda i: tuple(0 for _ in shape))


def _generator_kernel(idsT_ref, selT_ref, vpatT_ref, m1T_ref, b1T_ref,
                      w2T_ref, b2T_ref, w3T_ref, b3T_ref, o_ref):
    # Rebuild one-hot(attributeId)^T on-chip (transposed layout [K1, TB]):
    #   id_exp[j, b] = ids[j // V, b]   (tiny selection matmul, exact in bf16)
    #   onehot[j, b] = (id_exp[j, b] == j % V)
    # NOTE: out-of-range ids (>= 2*attrNum or < 0) give an all-zero one-hot
    # column (contribution dropped) rather than an error like torch.Embedding.
    ids_bf = idsT_ref[...].astype(jnp.bfloat16)                        # [Ap, TB]
    id_exp = jnp.dot(selT_ref[...], ids_bf,
                     preferred_element_type=jnp.float32)               # [K1p, TB]
    onehot = (jnp.abs(id_exp - vpatT_ref[...]) < 0.5).astype(m1T_ref.dtype)

    # Layer 1 (embedding gather folded into M1): [Hs,K1p] @ [K1p,TB] + [Hs,1]
    h1 = jnp.tanh(jnp.dot(m1T_ref[...], onehot,
                          preferred_element_type=jnp.float32) + b1T_ref[...])
    # Layer 2: [Hs,Hs] @ [Hs,TB] + [Hs,1]
    h2 = jnp.tanh(jnp.dot(w2T_ref[...], h1.astype(w2T_ref.dtype),
                          preferred_element_type=jnp.float32) + b2T_ref[...])
    # Layer 3: [Us,Hs] @ [Hs,TB] + [Us,1]
    o_ref[...] = jnp.tanh(
        jnp.dot(w3T_ref[...], h2.astype(w3T_ref.dtype),
                preferred_element_type=jnp.float32) + b3T_ref[...]
    ).astype(o_ref.dtype)


def prepare_generator_params(params, *, weight_dtype=jnp.bfloat16):
    """One-time, per-parameter-set precompute (hoisted off the call path)."""
    emb = params["emb"]                      # [2A, P]
    w1, b1 = params["w1"], params["b1"]      # [A*P, H], [1, H]   (W stored [in,out])
    w2, b2 = params["w2"], params["b2"]      # [H, H],   [1, H]
    w3, b3 = params["w3"], params["b3"]      # [H, U],   [1, U]

    V, P = emb.shape
    A = V // 2
    H = w1.shape[1]
    U = w3.shape[1]
    K1 = A * V

    Ap = _round_up(A, 8)
    K1p = _round_up(K1, 8)
    Hs = _round_up(H, 8)
    Us = _round_up(U, 8)

    # selT[a*V + v, a] = 1  ->  id_exp[j, b] = ids[j // V, b]
    selT = jnp.pad(jnp.repeat(jnp.eye(A, dtype=jnp.float32), V, axis=0),
                   ((0, K1p - K1), (0, Ap - A))).astype(jnp.bfloat16)
    # vpatT[j, 0] = j % V  (padded rows set to -1: never match a valid id)
    vpatT = jnp.pad(jnp.tile(jnp.arange(V, dtype=jnp.float32), A).reshape(K1, 1),
                    ((0, K1p - K1), (0, 0)), constant_values=-1.0)
    # Fold embedding table into layer 1 (kernel uses M1^T):
    #   M1[a*V+v, h] = sum_p emb[v, p] * W1[a*P+p, h]
    # TODO(synk): for large attrNum (K1 = 2*A^2 grows quadratically) fall back
    # to a wrapper-side jnp.take gather of the [B, A*P] feature instead.
    m1 = jnp.einsum("vp,aph->avh", emb, w1.reshape(A, P, H)).reshape(K1, H)
    m1T = _pad2(m1.T, Hs, K1p).astype(weight_dtype)
    w2T = _pad2(w2.T, Hs, Hs).astype(weight_dtype)
    w3T = _pad2(w3.T, Us, Hs).astype(weight_dtype)
    b1T = _pad2(b1.reshape(H, 1), Hs, 1)
    b2T = _pad2(b2.reshape(H, 1), Hs, 1)
    b3T = _pad2(b3.reshape(U, 1), Us, 1)

    return dict(selT=selT, vpatT=vpatT, m1T=m1T, b1T=b1T,
                w2T=w2T, b2T=b2T, w3T=w3T, b3T=b3T)


@partial(jax.jit, static_argnames=("user_emb_dim", "block_b"))
def generator_forward(attribute_id, prepped, *, user_emb_dim, block_b=2048):
    """attribute_id: int [B, attrNum]; returns float32 [B, userEmbDim]."""
    B, A = attribute_id.shape
    selT, vpatT = prepped["selT"], prepped["vpatT"]
    m1T, b1T = prepped["m1T"], prepped["b1T"]
    w2T, b2T = prepped["w2T"], prepped["b2T"]
    w3T, b3T = prepped["w3T"], prepped["b3T"]
    K1p, Ap = selT.shape
    Hs = w2T.shape[0]
    Us = w3T.shape[0]
    U = user_emb_dim

    # Batch tile: lanes -> multiple of 128; keep the grid length >= 2 (even)
    # when the batch is big enough so both v7x TensorCores get work.
    LANE = 128
    nb_t = max(1, pl.cdiv(B, block_b))
    if B > LANE:
        nb_t = max(2, nb_t)
        nb_t += nb_t % 2
    TB = _round_up(pl.cdiv(B, nb_t), LANE)
    nb = pl.cdiv(B, TB)
    Bp = nb * TB

    idsT = jnp.pad(attribute_id.astype(jnp.int32).T,
                   ((0, Ap - A), (0, Bp - B)))                         # [Ap, Bp]

    wbytes = jnp.dtype(m1T.dtype).itemsize
    cost = pl.CostEstimate(
        flops=2 * Bp * (K1p * Ap + Hs * K1p + Hs * Hs + Us * Hs),
        transcendentals=Bp * (2 * Hs + Us),
        bytes_accessed=(Bp * Ap * 4 + Bp * Us * 4
                        + (Hs * K1p + Hs * Hs + Us * Hs) * wbytes
                        + K1p * Ap * 2 + (K1p + 2 * Hs + Us) * 4),
    )

    # TODO(synk): if hiddenDim scales to ~4096+, add a reduction-last grid axis
    # over Hs for layers 2/3 with a VMEM f32 accumulator and raise
    # vmem_limit_bytes so the resident weights fit v7x's 64 MiB VMEM /
    # v5e's 16 MiB scoped default.
    out = pl.pallas_call(
        _generator_kernel,
        out_shape=jax.ShapeDtypeStruct((Us, Bp), jnp.float32),
        grid=(nb,),
        in_specs=[
            pl.BlockSpec((Ap, TB), lambda i: (0, i)),   # attributeId^T columns
            _const_spec((K1p, Ap)),                     # selection matrix
            _const_spec((K1p, 1)),                      # j % V pattern
            _const_spec((Hs, K1p)),                     # emb folded into W1 (^T)
            _const_spec((Hs, 1)),                       # b1
            _const_spec((Hs, Hs)),                      # W2^T
            _const_spec((Hs, 1)),                       # b2
            _const_spec((Us, Hs)),                      # W3^T
            _const_spec((Us, 1)),                       # b3
        ],
        out_specs=pl.BlockSpec((Us, TB), lambda i: (0, i)),
        compiler_params=pltpu.CompilerParams(
            dimension_semantics=("parallel",)),
        cost_estimate=cost,
    )(idsT, selT, vpatT, m1T, b1T, w2T, b2T, w3T, b3T)

    # Consumers that can take the transposed [U, B] slab directly avoid this
    # small extra pass.
    return out[:U, :B].T


# --------------------------- init + reference --------------------------------

def _xavier_uniform(key, fan_in, fan_out, shape):
    limit = (6.0 / (fan_in + fan_out)) ** 0.5
    return jax.random.uniform(key, shape, jnp.float32, -limit, limit)


def init_params(key, attr_num, attr_present_dim, hidden_dim, user_emb_dim):
    F = attr_num * attr_present_dim
    k = jax.random.split(key, 7)
    emb = _xavier_uniform(k[0], 2 * attr_num, attr_present_dim,
                          (2 * attr_num, attr_present_dim))
    # Linear weights stored [in, out] = PyTorch weight.T (xavier limit symmetric).
    w1 = _xavier_uniform(k[1], F, hidden_dim, (F, hidden_dim))
    w2 = _xavier_uniform(k[2], hidden_dim, hidden_dim, (hidden_dim, hidden_dim))
    w3 = _xavier_uniform(k[3], hidden_dim, user_emb_dim, (hidden_dim, user_emb_dim))
    b1 = jax.random.uniform(k[4], (1, hidden_dim), jnp.float32,
                            -1.0 / F ** 0.5, 1.0 / F ** 0.5)
    b2 = jax.random.uniform(k[5], (1, hidden_dim), jnp.float32,
                            -1.0 / hidden_dim ** 0.5, 1.0 / hidden_dim ** 0.5)
    b3 = jax.random.uniform(k[6], (1, user_emb_dim), jnp.float32,
                            -1.0 / hidden_dim ** 0.5, 1.0 / hidden_dim ** 0.5)
    return dict(emb=emb, w1=w1, b1=b1, w2=w2, b2=b2, w3=w3, b3=b3)


def reference(attribute_id, params):
    feat = jnp.take(params["emb"], attribute_id, axis=0).reshape(
        attribute_id.shape[0], -1)
    h1 = jnp.tanh(feat @ params["w1"] + params["b1"])
    h2 = jnp.tanh(h1 @ params["w2"] + params["b2"])
    return jnp.tanh(h2 @ params["w3"] + params["b3"])


if __name__ == "__main__":
    attr_num, attr_present_dim, hidden_dim, user_emb_dim = 4, 8, 32, 16

    key = jax.random.PRNGKey(0)
    pkey, k1, k2 = jax.random.split(key, 3)
    params = init_params(pkey, attr_num, attr_present_dim, hidden_dim, user_emb_dim)

    # Case 1: tiny batch, single grid block, f32 weights (tight numeric check;
    # the bf16 selection matmul is exact since ids < 2*attrNum).
    prepped_f32 = prepare_generator_params(params, weight_dtype=jnp.float32)
    ids_a = jax.random.randint(k1, (8, attr_num), 0, 2 * attr_num, dtype=jnp.int32)
    out_a = generator_forward(ids_a, prepped_f32, user_emb_dim=user_emb_dim)
    jax.block_until_ready(out_a)
    ref_a = reference(ids_a, params)
    assert out_a.shape == (8, user_emb_dim)
    assert jnp.allclose(out_a, ref_a, atol=1e-4, rtol=1e-4), \
        float(jnp.max(jnp.abs(out_a - ref_a)))

    # Case 2: batch > 128 with a small forced block -> multi-block grid + tail
    # padding, default bf16 weights with f32 accumulation (looser check).
    prepped_bf16 = prepare_generator_params(params)          # bf16 default
    ids_b = jax.random.randint(k2, (300, attr_num), 0, 2 * attr_num,
                               dtype=jnp.int32)
    out_b = generator_forward(ids_b, prepped_bf16, user_emb_dim=user_emb_dim,
                              block_b=128)
    jax.block_until_ready(out_b)
    ref_b = reference(ids_b, params)
    assert out_b.shape == (300, user_emb_dim)
    assert jnp.allclose(out_b, ref_b, atol=3e-2, rtol=0.0), \
        float(jnp.max(jnp.abs(out_b - ref_b)))

    print("KERNEL_OK")
</pallas_src>

<mosaic_0001>
module attributes {stable_mosaic.version = 11 : i64} {
  func.func @_generator_kernel(%arg0: i32, %arg1: memref<8x128xi32, #tpu.memory_space<vmem>>, %arg2: memref<32x8xbf16, #tpu.memory_space<vmem>>, %arg3: memref<32x1xf32, #tpu.memory_space<vmem>>, %arg4: memref<32x32xf32, #tpu.memory_space<vmem>>, %arg5: memref<32x1xf32, #tpu.memory_space<vmem>>, %arg6: memref<32x32xf32, #tpu.memory_space<vmem>>, %arg7: memref<32x1xf32, #tpu.memory_space<vmem>>, %arg8: memref<16x32xf32, #tpu.memory_space<vmem>>, %arg9: memref<16x1xf32, #tpu.memory_space<vmem>>, %arg10: memref<16x128xf32, #tpu.memory_space<vmem>>) attributes {dimension_semantics = [#tpu.dimension_semantics<parallel>], iteration_bounds = array<i64: 1>, scalar_prefetch = 0 : i64, scratch_operands = 0 : i64, tpu.core_type = #tpu.core_type<tc>, window_params = [{transform_indices = @transform_0, window_bounds = array<i64: 8, 128>}, {pipeline_mode = #tpu.pipeline_mode<synchronous>, transform_indices = @transform_1, window_bounds = array<i64: 32, 8>}, {pipeline_mode = #tpu.pipeline_mode<synchronous>, transform_indices = @transform_2, window_bounds = array<i64: 32, 1>}, {pipeline_mode = #tpu.pipeline_mode<synchronous>, transform_indices = @transform_3, window_bounds = array<i64: 32, 32>}, {pipeline_mode = #tpu.pipeline_mode<synchronous>, transform_indices = @transform_4, window_bounds = array<i64: 32, 1>}, {pipeline_mode = #tpu.pipeline_mode<synchronous>, transform_indices = @transform_5, window_bounds = array<i64: 32, 32>}, {pipeline_mode = #tpu.pipeline_mode<synchronous>, transform_indices = @transform_6, window_bounds = array<i64: 32, 1>}, {pipeline_mode = #tpu.pipeline_mode<synchronous>, transform_indices = @transform_7, window_bounds = array<i64: 16, 32>}, {pipeline_mode = #tpu.pipeline_mode<synchronous>, transform_indices = @transform_8, window_bounds = array<i64: 16, 1>}, {transform_indices = @transform_9, window_bounds = array<i64: 16, 128>}]} {
    %c0 = arith.constant 0 : index
    %c0_0 = arith.constant 0 : index
    %0 = vector.load %arg1[%c0, %c0_0] : memref<8x128xi32, #tpu.memory_space<vmem>>, vector<8x128xi32>
    %1 = arith.sitofp %0 : vector<8x128xi32> to vector<8x128xbf16>
    %c0_1 = arith.constant 0 : index
    %c0_2 = arith.constant 0 : index
    %2 = vector.load %arg2[%c0_1, %c0_2] : memref<32x8xbf16, #tpu.memory_space<vmem>>, vector<32x8xbf16>
    %cst = arith.constant dense<0.000000e+00> : vector<32x128xf32>
    %3 = tpu.matmul %2, %1, %cst {dimension_numbers = #tpu.dot_dimension_numbers<[1], [0], [0], [1], [0, 0, 1, 1], [], []>} : vector<32x8xbf16>, vector<8x128xbf16>, vector<32x128xf32> -> vector<32x128xf32>
    %c0_3 = arith.constant 0 : index
    %c0_4 = arith.constant 0 : index
    %4 = vector.load %arg3[%c0_3, %c0_4] : memref<32x1xf32, #tpu.memory_space<vmem>>, vector<32x1xf32>
    %5 = vector.broadcast %4 : vector<32x1xf32> to vector<32x128xf32>
    %6 = arith.subf %3, %5 : vector<32x128xf32>
    %7 = math.absf %6 : vector<32x128xf32>
    %cst_5 = arith.constant 5.000000e-01 : f32
    %8 = vector.broadcast %cst_5 : f32 to vector<32x128xf32>
    %9 = arith.cmpf olt, %7, %8 : vector<32x128xf32>
    %10 = arith.extui %9 : vector<32x128xi1> to vector<32x128xi32>
    %11 = arith.sitofp %10 : vector<32x128xi32> to vector<32x128xf32>
    %c0_6 = arith.constant 0 : index
    %c0_7 = arith.constant 0 : index
    %12 = vector.load %arg4[%c0_6, %c0_7] : memref<32x32xf32, #tpu.memory_space<vmem>>, vector<32x32xf32>
    %cst_8 = arith.constant dense<0.000000e+00> : vector<32x128xf32>
    %13 = tpu.matmul %12, %11, %cst_8 {dimension_numbers = #tpu.dot_dimension_numbers<[1], [0], [0], [1], [0, 0, 1, 1], [], []>} : vector<32x32xf32>, vector<32x128xf32>, vector<32x128xf32> -> vector<32x128xf32>
    %c0_9 = arith.constant 0 : index
    %c0_10 = arith.constant 0 : index
    %14 = vector.load %arg5[%c0_9, %c0_10] : memref<32x1xf32, #tpu.memory_space<vmem>>, vector<32x1xf32>
    %15 = vector.broadcast %14 : vector<32x1xf32> to vector<32x128xf32>
    %16 = arith.addf %13, %15 : vector<32x128xf32>
    %17 = math.tanh %16 : vector<32x128xf32>
    %c0_11 = arith.constant 0 : index
    %c0_12 = arith.constant 0 : index
    %18 = vector.load %arg6[%c0_11, %c0_12] : memref<32x32xf32, #tpu.memory_space<vmem>>, vector<32x32xf32>
    %cst_13 = arith.constant dense<0.000000e+00> : vector<32x128xf32>
    %19 = tpu.matmul %18, %17, %cst_13 {dimension_numbers = #tpu.dot_dimension_numbers<[1], [0], [0], [1], [0, 0, 1, 1], [], []>} : vector<32x32xf32>, vector<32x128xf32>, vector<32x128xf32> -> vector<32x128xf32>
    %c0_14 = arith.constant 0 : index
    %c0_15 = arith.constant 0 : index
    %20 = vector.load %arg7[%c0_14, %c0_15] : memref<32x1xf32, #tpu.memory_space<vmem>>, vector<32x1xf32>
    %21 = vector.broadcast %20 : vector<32x1xf32> to vector<32x128xf32>
    %22 = arith.addf %19, %21 : vector<32x128xf32>
    %23 = math.tanh %22 : vector<32x128xf32>
    %c0_16 = arith.constant 0 : index
    %c0_17 = arith.constant 0 : index
    %24 = vector.load %arg8[%c0_16, %c0_17] : memref<16x32xf32, #tpu.memory_space<vmem>>, vector<16x32xf32>
    %cst_18 = arith.constant dense<0.000000e+00> : vector<16x128xf32>
    %25 = tpu.matmul %24, %23, %cst_18 {dimension_numbers = #tpu.dot_dimension_numbers<[1], [0], [0], [1], [0, 0, 1, 1], [], []>} : vector<16x32xf32>, vector<32x128xf32>, vector<16x128xf32> -> vector<16x128xf32>
    %c0_19 = arith.constant 0 : index
    %c0_20 = arith.constant 0 : index
    %26 = vector.load %arg9[%c0_19, %c0_20] : memref<16x1xf32, #tpu.memory_space<vmem>>, vector<16x1xf32>
    %27 = vector.broadcast %26 : vector<16x1xf32> to vector<16x128xf32>
    %28 = arith.addf %25, %27 : vector<16x128xf32>
    %29 = math.tanh %28 : vector<16x128xf32>
    %c0_21 = arith.constant 0 : index
    %c0_22 = arith.constant 0 : index
    %30 = vector.load %arg10[%c0_21, %c0_22] : memref<16x128xf32, #tpu.memory_space<vmem>>, vector<16x128xf32>
    tpu.vector_store %arg10[%c0_21, %c0_22], %29 {strides = array<i32>} : memref<16x128xf32, #tpu.memory_space<vmem>>, vector<16x128xf32>,
    return
  }
  func.func @transform_0(%arg0: i32) -> (i32, i32) {
    %c0_i32 = arith.constant 0 : i32
    %c0_i32_0 = arith.constant 0 : i32
    return %c0_i32, %arg0 : i32, i32
  }
  func.func @transform_1(%arg0: i32) -> (i32, i32) {
    %c0_i32 = arith.constant 0 : i32
    %c0_i32_0 = arith.constant 0 : i32
    %c0_i32_1 = arith.constant 0 : i32
    return %c0_i32, %c0_i32_0 : i32, i32
  }
  func.func @transform_2(%arg0: i32) -> (i32, i32) {
    %c0_i32 = arith.constant 0 : i32
    %c0_i32_0 = arith.constant 0 : i32
    %c0_i32_1 = arith.constant 0 : i32
    return %c0_i32, %c0_i32_0 : i32, i32
  }
  func.func @transform_3(%arg0: i32) -> (i32, i32) {
    %c0_i32 = arith.constant 0 : i32
    %c0_i32_0 = arith.constant 0 : i32
    %c0_i32_1 = arith.constant 0 : i32
    return %c0_i32, %c0_i32_0 : i32, i32
  }
  func.func @transform_4(%arg0: i32) -> (i32, i32) {
    %c0_i32 = arith.constant 0 : i32
    %c0_i32_0 = arith.constant 0 : i32
    %c0_i32_1 = arith.constant 0 : i32
    return %c0_i32, %c0_i32_0 : i32, i32
  }
  func.func @transform_5(%arg0: i32) -> (i32, i32) {
    %c0_i32 = arith.constant 0 : i32
    %c0_i32_0 = arith.constant 0 : i32
    %c0_i32_1 = arith.constant 0 : i32
    return %c0_i32, %c0_i32_0 : i32, i32
  }
  func.func @transform_6(%arg0: i32) -> (i32, i32) {
    %c0_i32 = arith.constant 0 : i32
    %c0_i32_0 = arith.constant 0 : i32
    %c0_i32_1 = arith.constant 0 : i32
    return %c0_i32, %c0_i32_0 : i32, i32
  }
  func.func @transform_7(%arg0: i32) -> (i32, i32) {
    %c0_i32 = arith.constant 0 : i32
    %c0_i32_0 = arith.constant 0 : i32
    %c0_i32_1 = arith.constant 0 : i32
    return %c0_i32, %c0_i32_0 : i32, i32
  }
  func.func @transform_8(%arg0: i32) -> (i32, i32) {
    %c0_i32 = arith.constant 0 : i32
    %c0_i32_0 = arith.constant 0 : i32
    %c0_i32_1 = arith.constant 0 : i32
    return %c0_i32, %c0_i32_0 : i32, i32
  }
  func.func @transform_9(%arg0: i32) -> (i32, i32) {
    %c0_i32 = arith.constant 0 : i32
    %c0_i32_0 = arith.constant 0 : i32
    return %c0_i32, %arg0 : i32, i32
  }
}

</mosaic_0001>

<bundles_post_ra>
// kernel: generator_forward.1
= control target key start
LH: loop header
LB: loop body
LE: loop exit
PB: predicated region body
PF: predicated region fallthrough
CT: control target
= control target key end

     0   :  { %vm50_vm0 = vcmask 64512   ;;  %v659_v1 = vmov 0   ;;  %vm57_vm1 = vcmask 1043456   ;;  %vm182_vm2 = vcmask 261120   ;;  %s810_s0 = inlined_call_operand.vmem [shape: s32[8,128], index: 0, kind: input, shape index: {}]   ;;  %s811_s1 = inlined_call_operand.vmem [shape: bf16[32,8], index: 1, kind: input, shape index: {}]   ;;  %s812_s2 = inlined_call_operand.vmem [shape: f32[32,1], index: 2, kind: input, shape index: {}]   ;;  %s813_s4 = inlined_call_operand.vmem [shape: f32[32,1], index: 4, kind: input, shape index: {}]   ;;  %s814_s6 = inlined_call_operand.vmem [shape: f32[32,1], index: 6, kind: input, shape index: {}]   ;;  %s815_s8 = inlined_call_operand.vmem [shape: f32[16,1], index: 8, kind: input, shape index: {}]   ;;  %s816_s3 = inlined_call_operand.vmem [shape: f32[32,32], index: 3, kind: input, shape index: {}]   ;;  %s817_s5 = inlined_call_operand.vmem [shape: f32[32,32], index: 5, kind: input, shape index: {}]   ;;  %s818_s7 = inlined_call_operand.vmem [shape: f32[16,32], index: 7, kind: input, shape index: {}]   ;;  %s819_s9 = inlined_call_operand.vmem [shape: f32[16,128], index: 9, kind: output, shape index: {}]  }
   0x1   :  { %v33_v0 = vld [vmem:[%s810_s0] sm:$0xff]  ;;  %635 = vset.pattern.permute.xlu0 %v659_v1  ;;  %636 = vset.pattern.permute.xlu1 %v659_v1  ;;  %v112_v5 = vld [vmem:[%s812_s2 + $0x10] sm:$0xff]  ;;  %v111_v7 = vld [vmem:[%s812_s2 + $0x8] sm:$0xff]  ;;  %v660_v38 = vmov 1.0|1.0  }
   0x2   :  { %v34_v2 = vcvt.s32.f32 %v33_v0  ;;  %v637_v3 = vld [vmem:[%s811_s1] sm:$0xff]   ;;  %126 = vperm.xlu1 %636, %v112_v5   ;;  %v638_v9 = vld [vmem:[%s811_s1 + $0x8] sm:$0xff]   ;;  %v113_v10 = vld [vmem:[%s812_s2 + $0x18] sm:$0xff] }
   0x3   :  { %v110_v4 = vld [vmem:[%s812_s2] sm:$0xff]  ;;  %565 = vmatprep.mubr.msk.bf16.mxu0 %vm50_vm0, %v637_v3  ;;  %v159_v12 = vld [vmem:[%s813_s4 + $0x8] sm:$0xff]  ;;  %v160_v13 = vld [vmem:[%s813_s4 + $0x10] sm:$0xff] }
   0x4   :  { %v35_v6 = vpack.c.bf16 %v34_v2, %v34_v2  ;;  %116 = vperm.xlu0 %635, %v110_v4   ;;  %v158_v11 = vld [vmem:[%s813_s4] sm:$0xff]  ;;  %v161_v14 = vld [vmem:[%s813_s4 + $0x18] sm:$0xff]  ;;  %v289_v16 = vld [vmem:[%s814_s6 + $0x8] sm:$0xff] }
   0x5   :  { %v288_v15 = vld [vmem:[%s814_s6] sm:$0xff]  ;;  %v290_v17 = vld [vmem:[%s814_s6 + $0x10] sm:$0xff]  ;;  %v291_v18 = vld [vmem:[%s814_s6 + $0x18] sm:$0xff] }
   0x6   :  { %632 = vmatprep.subr.msk.bf16.mxu0 %vm57_vm1, %v35_v6  ;;  %v59_v8 = vsel %vm57_vm1, %v35_v6, 0  ;;  %131 = vperm.xlu1 %636, %v113_v10   ;;  %v415_v19 = vld [vmem:[%s815_s8] sm:$0xff]  ;;  %v416_v20 = vld [vmem:[%s815_s8 + $0x8] sm:$0xff]  ;;  %v156_v40 = vld [vmem:[%s816_s3 + $0x10] sm:$0xff] }
   0x7   :  { %564 = vmatpush3.bf16.msra.mxu0 %v59_v8  ;;  %v154_v21 = vld [vmem:[%s816_s3] sm:$0xff]  ;;  %v155_v39 = vld [vmem:[%s816_s3 + $0x8] sm:$0xff]  ;;  %v157_v41 = vld [vmem:[%s816_s3 + $0x18] sm:$0xff] }
   0x8   :  { %121 = vperm.xlu0 %635, %v111_v7   ;;  %577 = vmatprep.mubr.msk.f32.mxu1 %vm182_vm2, %v154_v21  ;;  %v284_v42 = vld [vmem:[%s817_s5] sm:$0xff]  ;;  %v285_v61 = vld [vmem:[%s817_s5 + $0x8] sm:$0xff]  ;;  %v286_v62 = vld [vmem:[%s817_s5 + $0x10] sm:$0xff] }
   0x9   :  { %v287_v63 = vld [vmem:[%s817_s5 + $0x18] sm:$0xff]  ;;  %v413_v0 = vld [vmem:[%s818_s7] sm:$0xff] }
   0xa   :  { %566 = vmatmul.mubr.msk.bf16.vlgmr.msra.gmra.mrb[0].mxu0 %vm50_vm0, %v638_v9  ;;  %169 = vperm.xlu1 %636, %v159_v12  }
   0xb   :  { %591 = vmatprep.mubr.msk.f32.mxu0 %vm182_vm2, %v284_v42 }
   0xc   :  { %164 = vperm.xlu0 %635, %v158_v11  }
   0xe   :  { %179 = vperm.xlu1 %636, %v161_v14  }
  0x10   :  { %174 = vperm.xlu0 %635, %v160_v13  }
  0x12   :  { %299 = vperm.xlu1 %636, %v289_v16  }
  0x14   :  { %294 = vperm.xlu0 %635, %v288_v15  }
  0x16   :  { %309 = vperm.xlu1 %636, %v291_v18  }
  0x18   :  { %304 = vperm.xlu0 %635, %v290_v17  }
  0x1a   :  { %424 = vperm.xlu1 %636, %v416_v20  }
  0x1c   :  { %419 = vperm.xlu0 %635, %v415_v19   ;;  %v414_v19 = vld [vmem:[%s818_s7 + $0x8] sm:$0xff] }
  0x81   :  { %v127_v22 = vpop.permute.xlu1 %126 }
  0x83   :  { %v117_v23 = vpop.permute.xlu0 %116 }
  0x85   :  { %v132_v27 = vpop.permute.xlu1 %131 }
  0x87   :  { %v122_v30 = vpop.permute.xlu0 %121 }
  0x89   :  { %v170_v43 = vpop.permute.xlu1 %169 }
  0x8b   :  { %v165_v44 = vpop.permute.xlu0 %164 }
  0x8d   :  { %v180_v49 = vpop.permute.xlu1 %179 }
  0x8f   :  { %v175_v51 = vpop.permute.xlu0 %174 }
  0x91   :  { %v300_v1 = vpop.permute.xlu1 %299 }
  0x93   :  { %v295_v2 = vpop.permute.xlu0 %294 }
  0x95   :  { %v310_v7 = vpop.permute.xlu1 %309 }
  0x97   :  { %v305_v9 = vpop.permute.xlu0 %304 }
  0x99   :  { %v425_v20 = vpop.permute.xlu1 %424 }
  0xdd   :  { %v567_v24 = vpop.f32.mrb[0].mxu0 }
  0xde   :  { %v136_v25 = vsub.f32 %v567_v24, %v127_v22  ;;  %v95_v26 = vpop.f32.mrb[1].mxu0  ;;  %v420_v22 = vpop.permute.xlu0 %419 }
  0xdf   :  { %v134_v28 = vsub.f32 %v95_v26, %v117_v23  ;;  %v568_v29 = vpop.f32.mrb[2].mxu0 }
  0xe0   :  { %v140_v31 = vand.u32 2147483647, %v136_v25  ;;  %v137_v32 = vsub.f32 %v568_v29, %v132_v27  ;;  %v98_v33 = vpop.f32.mrb[3].mxu0 }
  0xe1   :  { %v138_v34 = vand.u32 2147483647, %v134_v28  ;;  %v135_v35 = vsub.f32 %v98_v33, %v122_v30 }
  0xe2   :  { %v141_v36 = vand.u32 2147483647, %v137_v32  ;;  %vm144_vm3 = vcmp.lt.f32.partialorder %v140_v31, 0.5 }
  0xe3   :  { %v139_v37 = vand.u32 2147483647, %v135_v35  ;;  %vm142_vm6 = vcmp.lt.f32.partialorder %v138_v34, 0.5 }
  0xe4   :  { %vm145_vm4 = vcmp.lt.f32.partialorder %v141_v36, 0.5 }
  0xe5   :  { %vm612_vm5 = vmpackc.low %vm145_vm4, %vm144_vm3  ;;  %vm143_vm7 = vcmp.lt.f32.partialorder %v139_v37, 0.5 }
  0xe6   :  { %vm608_vm8 = vmpackc.low %vm143_vm7, %vm142_vm6 }
  0xe7   :  { %609 = vmatprep.subr.msk.bf16.mxu1 %vm608_vm8, %v660_v38 }
  0xe8   :  { %611 = vmatpush3.bf16.msk.msra.mxu1 %vm608_vm8, %v660_v38 }
  0xe9   :  { %613 = vmatprep.subr.msk.bf16.mxu1 %vm612_vm5, %v660_v38 }
  0xec   :  { %615 = vmatpush3.bf16.msk.msra.mxu1 %vm612_vm5, %v660_v38 }
  0xef   :  { %578 = vmatmul.mubr.msk.f32.vlgmr.msra.gmra.mrb[0].mxu1 %vm182_vm2, %v155_v39 }
  0xf0   :  { %580 = vmatprep.mubr.msk.f32.mxu1 %vm182_vm2, %v156_v40 }
  0xf3   :  { %581 = vmatmul.mubr.msk.f32.gmra.mrb[2].mxu1 %vm182_vm2, %v157_v41 }
  0xf4   :  { %605 = vmatprep.mubr.msk.f32.mxu1 %vm182_vm2, %v413_v0 }
 0x1c2   :  { %v579_v45 = vpop.f32.mrb[0].mxu1 }
 0x1c3   :  { %v267_v46 = vadd.f32 %v579_v45, %v170_v43  ;;  %v261_v47 = vpop.f32.mrb[1].mxu1 }
 0x1c4   :  { %v262_v48 = vadd.f32 %v261_v47, %v165_v44 }
 0x1c5   :  { %639 = vtanh.f32 %v267_v46 }
 0x1c6   :  { %641 = vtanh.f32 %v262_v48  ;;  %v582_v50 = vpop.f32.mrb[2].mxu1 }
 0x1c7   :  { %v277_v52 = vadd.f32 %v582_v50, %v180_v49  ;;  %v271_v53 = vpop.f32.mrb[3].mxu1 }
 0x1c8   :  { %v272_v54 = vadd.f32 %v271_v53, %v175_v51 }
 0x1c9   :  { %643 = vtanh.f32 %v277_v52 }
 0x1ca   :  { %645 = vtanh.f32 %v272_v54 }
 0x1cf   :  { %v640_v55 = vpop.eup %639 }
 0x1d0   :  { %v642_v56 = vpop.eup %641 }
 0x1d1   :  { %v616_v57 = vpack.c.bf16 %v640_v55, %v642_v56 }
 0x1d3   :  { %v644_v58 = vpop.eup %643  ;;  %617 = vmatprep.subr.bf16.mxu0 %v616_v57 }
 0x1d4   :  { %v646_v59 = vpop.eup %645  ;;  %619 = vmatpush3.bf16.msra.mxu0 %v616_v57 }
 0x1d5   :  { %v620_v60 = vpack.c.bf16 %v644_v58, %v646_v59 }
 0x1d7   :  { %621 = vmatprep.subr.bf16.mxu0 %v620_v60 }
 0x1d8   :  { %623 = vmatpush3.bf16.msra.mxu0 %v620_v60 }
 0x1db   :  { %592 = vmatmul.mubr.msk.f32.vlgmr.msra.gmra.mrb[4].mxu0 %vm182_vm2, %v285_v61 }
 0x1dc   :  { %594 = vmatprep.mubr.msk.f32.mxu0 %vm182_vm2, %v286_v62 }
 0x1df   :  { %595 = vmatmul.mubr.msk.f32.gmra.mrb[6].mxu0 %vm182_vm2, %v287_v63 }
 0x2ae   :  { %v593_v3 = vpop.f32.mrb[4].mxu0 }
 0x2af   :  { %v396_v4 = vadd.f32 %v593_v3, %v300_v1  ;;  %v390_v5 = vpop.f32.mrb[5].mxu0 }
 0x2b0   :  { %v391_v6 = vadd.f32 %v390_v5, %v295_v2 }
 0x2b1   :  { %647 = vtanh.f32 %v396_v4 }
 0x2b2   :  { %649 = vtanh.f32 %v391_v6  ;;  %v596_v8 = vpop.f32.mrb[6].mxu0 }
 0x2b3   :  { %v406_v10 = vadd.f32 %v596_v8, %v310_v7  ;;  %v400_v11 = vpop.f32.mrb[7].mxu0 }
 0x2b4   :  { %v401_v12 = vadd.f32 %v400_v11, %v305_v9 }
 0x2b5   :  { %651 = vtanh.f32 %v406_v10 }
 0x2b6   :  { %653 = vtanh.f32 %v401_v12 }
 0x2bb   :  { %v648_v13 = vpop.eup %647 }
 0x2bc   :  { %v650_v14 = vpop.eup %649 }
 0x2bd   :  { %v624_v15 = vpack.c.bf16 %v648_v13, %v650_v14 }
 0x2bf   :  { %v652_v16 = vpop.eup %651  ;;  %625 = vmatprep.subr.bf16.mxu1 %v624_v15 }
 0x2c0   :  { %v654_v17 = vpop.eup %653  ;;  %627 = vmatpush3.bf16.msra.mxu1 %v624_v15 }
 0x2c1   :  { %v628_v18 = vpack.c.bf16 %v652_v16, %v654_v17 }
 0x2c3   :  { %629 = vmatprep.subr.bf16.mxu1 %v628_v18 }
 0x2c4   :  { %631 = vmatpush3.bf16.msra.mxu1 %v628_v18 }
 0x2c7   :  { %606 = vmatmul.mubr.msk.f32.vlgmr.msra.gmra.mrb[4].mxu1 %vm182_vm2, %v414_v19 }
 0x39a   :  { %v607_v21 = vpop.f32.mrb[4].mxu1 }
 0x39b   :  { %v505_v23 = vadd.f32 %v607_v21, %v425_v20  ;;  %v499_v24 = vpop.f32.mrb[5].mxu1 }
 0x39c   :  { %v500_v25 = vadd.f32 %v499_v24, %v420_v22 }
 0x39d   :  { %655 = vtanh.f32 %v505_v23 }
 0x39e   :  { %657 = vtanh.f32 %v500_v25 }
 0x3a7   :  { %v656_v26 = vpop.eup %655 }
 0x3a8   :  { %v658_v27 = vpop.eup %657  ;;  %511 = vst [vmem:[%s819_s9 + $0x8] sm:$0xff] %v656_v26 }
 0x3a9   :  { %510 = vst [vmem:[%s819_s9] sm:$0xff] %v658_v27 }

</bundles_post_ra>
